<compile_context>
chip_gen: v6e
topology: v6e:2x2x1
jax: 0.10.0
libtpu: 0.0.40
codegen_flags: <defaults>
</compile_context>

<pallas_src>
import functools

import jax
import jax.numpy as jnp
from jax.experimental import pallas as pl
from jax.experimental.pallas import tpu as pltpu

SELU_ALPHA = 1.6732632423543772
SELU_SCALE = 1.0507009873554805
NEG = -1e30                      # bias for unused logit lanes (exp -> 0 in f32)
VMEM_BUDGET = 48 * 1024 * 1024   # conservative: below v7x's 64 MiB physical VMEM

# Per-decode-step parameters (already split / padded / pre-cast), kernel order.
STEP_PARAM_ORDER = [
    "attn_dec",                       # (1, H)  additive-attention decoder-state proj
    "comb_we", "comb_wc", "comb_b",   # combine_inputs, weight split emb/context
    "w_ih", "w_hh", "b_ih", "b_hh",   # GRU weights, gates fused (r|z|n)
    "pred_w", "pred_b",               # predict head, eos folded in, lane-padded
    "fuse_wo", "fuse_b",              # do_copy fuse: decoder-output half
    "copy_w", "copy_b",               # copy scorer row vector, lane-padded
]


def _round_up(x, m):
    return ((x + m - 1) // m) * m


def _selu(x):
    # clamp the exp argument so the discarded branch never produces inf
    return SELU_SCALE * jnp.where(
        x > 0, x, SELU_ALPHA * (jnp.exp(jnp.minimum(x, 0.0)) - 1.0))


def _log_softmax(x):
    m = jnp.max(x, axis=-1, keepdims=True)
    s = x - m
    return s - jnp.log(jnp.sum(jnp.exp(s), axis=-1, keepdims=True))


def _mm(a, w):
    """MXU matmul: cast activation to the (pre-cast) weight dtype, f32 accumulate."""
    return jnp.dot(a.astype(w.dtype), w, preferred_element_type=jnp.float32)


# -----------------------------------------------------------------------------
# Kernel 1: per-sequence precompute (decode-step invariant work hoisted out of
# the per-token step):
#   enc_key  = sum(enc * attn_enc, axis=-1)    attention "key" term, (Bt, L, 1)
#   part_enc = selu(enc) @ fuse_we             copy-head enc projection, (Bt, L, FPAD)
# -----------------------------------------------------------------------------
def precompute_kernel(enc_ref, attn_enc_ref, fuse_we_ref, enc_key_ref, part_enc_ref):
    enc = enc_ref[...]                                         # (Bt, L, H) f32
    bt, L, H = enc.shape
    enc_key_ref[...] = jnp.sum(enc * attn_enc_ref[...], axis=2, keepdims=True)
    pe = _mm(_selu(enc).reshape(bt * L, H), fuse_we_ref[...])  # (Bt*L, FPAD) f32
    part_enc_ref[...] = pe.reshape(bt, L, -1)


# -----------------------------------------------------------------------------
# Kernel 2: one decode step for a (Bt, ...) batch tile.
# -----------------------------------------------------------------------------
def decode_step_kernel(emb_ref, h_ref, enc_ref, enc_key_ref, part_enc_ref,
                       attn_dec_ref,
                       comb_we_ref, comb_wc_ref, comb_b_ref,
                       w_ih_ref, w_hh_ref, b_ih_ref, b_hh_ref,
                       pred_w_ref, pred_b_ref,
                       fuse_wo_ref, fuse_b_ref,
                       copy_w_ref, copy_b_ref,
                       pred_out_ref, copy_out_ref, h_out_ref,
                       *, R):
    f32 = jnp.float32
    emb = emb_ref[...]                                         # (Bt, E)
    h = h_ref[...]                                             # (Bt, H)
    enc = enc_ref[...]                                         # (Bt, L, H)
    bt, L, H = enc.shape

    # ---- calc_context: additive attention, softmax over L -------------------
    # L stays in the sublane dim throughout ((Bt, L, 1) keepdims form) so no
    # lane<->sublane relayout is needed; the attn bias is softmax-invariant.
    dec_term = jnp.sum(h * attn_dec_ref[...], axis=1, keepdims=True)   # (Bt, 1)
    score = enc_key_ref[...] + dec_term[:, :, None]                    # (Bt, L, 1)
    score = score - jnp.max(score, axis=1, keepdims=True)
    e = jnp.exp(score)
    attn = e / jnp.sum(e, axis=1, keepdims=True)                       # exact softmax
    context = jnp.sum(attn * enc, axis=1)                              # (Bt, H)

    # ---- combine_inputs(cat(emb, context)) with split weights ---------------
    x = _mm(emb, comb_we_ref[...]) + _mm(context, comb_wc_ref[...]) + comb_b_ref[...]

    # ---- one GRU-cell step: six per-gate matmuls fused into two (N = 3H) ----
    gi = _mm(x, w_ih_ref[...]) + b_ih_ref[...]                         # (Bt, 3H)
    gh = _mm(h, w_hh_ref[...]) + b_hh_ref[...]                         # (Bt, 3H)
    r = jax.nn.sigmoid(gi[:, :H] + gh[:, :H])
    z = jax.nn.sigmoid(gi[:, H:2 * H] + gh[:, H:2 * H])
    n = jnp.tanh(gi[:, 2 * H:] + r * gh[:, 2 * H:])
    h_new = (1.0 - z) * n + z * h                                      # (Bt, H)
    out = h_new

    # ---- predict head (eos folded in at lane R; pad lanes biased to NEG) ----
    logits = _mm(out, pred_w_ref[...]) + pred_b_ref[...]               # (Bt, PRED_PAD)
    pred_out_ref[...] = _log_softmax(logits)                           # lane-dense store
    eos = logits[:, R:R + 1]                                           # raw eos logit

    # ---- do_copy: per-step output half; enc half (part_enc) is precomputed --
    part_out = _mm(_selu(out), fuse_wo_ref[...])                       # (Bt, FPAD)
    f = _selu(part_enc_ref[...] + part_out[:, None, :] + fuse_b_ref[...])
    cp = jnp.sum(f * copy_w_ref[...], axis=2) + copy_b_ref[...]        # (Bt, L)
    # TODO(synk): for realistic L chunk the copy head over L (fori_loop) so the
    # (Bt, L, FPAD) intermediate stays within v7x's 64 MiB VMEM.

    # log_softmax over [cp | eos] without any in-kernel lane concatenation
    m = jnp.maximum(jnp.max(cp, axis=1, keepdims=True), eos)           # (Bt, 1)
    log_den = jnp.log(jnp.sum(jnp.exp(cp - m), axis=1, keepdims=True)
                      + jnp.exp(eos - m))
    copy_out_ref[...] = jnp.full((bt, copy_out_ref.shape[1]), NEG, dtype=f32)
    copy_out_ref[:, :L] = cp - m - log_den
    copy_out_ref[:, L:L + 1] = eos - m - log_den

    h_out_ref[...] = h_new


def _prepare_params(params, *, E, H, R, F, pred_pad, fuse_pad, compute_dtype):
    """Split / pad / pre-cast the PyTorch-style parameters (done once)."""
    cdt = compute_dtype
    p = {}
    aw = params["attn_w"]                              # (2H, 1): [:H] dec state, [H:] enc
    p["attn_dec"] = aw[:H, 0].reshape(1, H)
    p["attn_enc"] = aw[H:, 0].reshape(1, H)

    cw = params["comb_w"]                              # (E+H, E): rows [:E] emb, [E:] context
    p["comb_we"] = cw[:E, :].astype(cdt)
    p["comb_wc"] = cw[E:, :].astype(cdt)
    p["comb_b"] = params["comb_b"]

    p["w_ih"] = params["w_ih"].astype(cdt)             # (E, 3H), gate order r|z|n
    p["w_hh"] = params["w_hh"].astype(cdt)             # (H, 3H)
    p["b_ih"] = params["b_ih"]                         # (1, 3H) f32
    p["b_hh"] = params["b_hh"]

    # predict head: [pred | eos | zero-pad], bias pad lanes -> NEG
    pw = jnp.concatenate([params["pred_w"], params["eos_w"]], axis=1)      # (H, R+1)
    pb = jnp.concatenate([params["pred_b"], params["eos_b"]], axis=1)      # (1, R+1)
    p["pred_w"] = jnp.pad(pw, ((0, 0), (0, pred_pad - (R + 1)))).astype(cdt)
    p["pred_b"] = jnp.pad(pb, ((0, 0), (0, pred_pad - (R + 1))), constant_values=NEG)

    fw = params["fuse_w"]                              # (2H, F): rows [:H] out, [H:] enc
    p["fuse_wo"] = jnp.pad(fw[:H, :], ((0, 0), (0, fuse_pad - F))).astype(cdt)
    p["fuse_we"] = jnp.pad(fw[H:, :], ((0, 0), (0, fuse_pad - F))).astype(cdt)
    p["fuse_b"] = jnp.pad(params["fuse_b"], ((0, 0), (0, fuse_pad - F)))
    p["copy_w"] = jnp.pad(params["copy_w"][:, 0].reshape(1, F),
                          ((0, 0), (0, fuse_pad - F)))
    p["copy_b"] = params["copy_b"]
    return p


def decode_step(emb, h0, enc, params, *, block_b=None, compute_dtype=jnp.float32):
    B, E = emb.shape
    _, L, H = enc.shape
    R = params["pred_w"].shape[1]
    F = params["fuse_w"].shape[1]

    pred_pad = _round_up(R + 1, 128)      # lane-dense predict output slab
    copy_pad = _round_up(L + 1, 128)      # lane-dense copy output slab
    fuse_pad = _round_up(F, 128)          # lane-dense fuse feature dim (zero-padded)

    prep = _prepare_params(params, E=E, H=H, R=R, F=F,
                           pred_pad=pred_pad, fuse_pad=fuse_pad,
                           compute_dtype=compute_dtype)
    weights = [prep[k] for k in STEP_PARAM_ORDER]

    # Batch tile: >= 8 sublanes, cap at the MXU width (256 for bf16 on v6e/v7x,
    # else 128), and aim for >= 2 grid steps so both v7x TensorCores get work.
    if block_b is None:
        cap = 256 if compute_dtype == jnp.bfloat16 else 128
        block_b = max(8, min(cap, _round_up(-(-B // 2), 8)))
    bt = block_b

    def step_vmem_bytes(bt_):
        io = (bt_ * E + bt_ * H + bt_ * L * H + bt_ * L + bt_ * L * fuse_pad   # inputs
              + bt_ * pred_pad + bt_ * copy_pad + bt_ * H)                     # outputs
        w = sum(int(x.size) * x.dtype.itemsize for x in weights)
        return 2 * (io * 4 + w)           # 2x: default double-buffered pipeline

    # Re-derive the tile against the v7x (64 MiB) VMEM budget; v5e/v6e (128 MiB)
    # are looser, so this is the binding constraint.
    while bt > 8 and step_vmem_bytes(bt) > VMEM_BUDGET:
        bt = max(8, _round_up(bt // 2, 8))

    b_pad = _round_up(B, bt)
    if b_pad != B:
        pad = b_pad - B
        emb = jnp.pad(emb, ((0, pad), (0, 0)))
        h0 = jnp.pad(h0, ((0, pad), (0, 0)))
        enc = jnp.pad(enc, ((0, pad), (0, 0), (0, 0)))

    grid = (b_pad // bt,)
    cparams = pltpu.CompilerParams(dimension_semantics=("parallel",),
                                   vmem_limit_bytes=VMEM_BUDGET)

    # ---- per-sequence precompute (in a real autoregressive loop this runs
    # once per sequence, outside the per-token decode step) -------------------
    enc_key, part_enc = pl.pallas_call(
        precompute_kernel,
        grid=grid,
        in_specs=[
            pl.BlockSpec((bt, L, H), lambda i: (i, 0, 0)),
            pl.BlockSpec((1, H), lambda i: (0, 0)),
            pl.BlockSpec((H, fuse_pad), lambda i: (0, 0)),
        ],
        out_specs=[
            pl.BlockSpec((bt, L, 1), lambda i: (i, 0, 0)),
            pl.BlockSpec((bt, L, fuse_pad), lambda i: (i, 0, 0)),
        ],
        out_shape=[
            jax.ShapeDtypeStruct((b_pad, L, 1), jnp.float32),
            jax.ShapeDtypeStruct((b_pad, L, fuse_pad), jnp.float32),
        ],
        compiler_params=cparams,
    )(enc, prep["attn_enc"], prep["fuse_we"])

    def _const_map(ndim):
        return lambda i, _n=ndim: (0,) * _n

    in_specs = [
        pl.BlockSpec((bt, E), lambda i: (i, 0)),
        pl.BlockSpec((bt, H), lambda i: (i, 0)),
        pl.BlockSpec((bt, L, H), lambda i: (i, 0, 0)),
        pl.BlockSpec((bt, L, 1), lambda i: (i, 0, 0)),
        pl.BlockSpec((bt, L, fuse_pad), lambda i: (i, 0, 0)),
    ] + [pl.BlockSpec(w.shape, _const_map(w.ndim)) for w in weights]
    # TODO(synk): mark the constant weight specs pipeline_mode=pl.Buffered(1)
    # and stack the small biases into one array to cut DMA descriptors further.
    # TODO(synk): feed enc in bf16 at large L*H to halve the dominant HBM read.

    out_specs = [
        pl.BlockSpec((bt, pred_pad), lambda i: (i, 0)),
        pl.BlockSpec((bt, copy_pad), lambda i: (i, 0)),
        pl.BlockSpec((bt, H), lambda i: (i, 0)),
    ]
    out_shape = [
        jax.ShapeDtypeStruct((b_pad, pred_pad), jnp.float32),
        jax.ShapeDtypeStruct((b_pad, copy_pad), jnp.float32),
        jax.ShapeDtypeStruct((b_pad, H), jnp.float32),
    ]

    kernel = functools.partial(decode_step_kernel, R=R)
    pred_p, copy_p, h_p = pl.pallas_call(
        kernel,
        grid=grid,
        in_specs=in_specs,
        out_specs=out_specs,
        out_shape=out_shape,
        compiler_params=cparams,
    )(emb, h0, enc, enc_key, part_enc, *weights)

    # Slice BEFORE any downstream downcast so the NEG pad lanes never hit -inf.
    return pred_p[:B, :R + 1], copy_p[:B, :L + 1], h_p[:B]


def reference(emb, h0, enc, params):
    """Pure-JAX mirror of Decoder._decode_step (GRU cell) for validation."""
    B, E = emb.shape
    _, L, H = enc.shape
    aw = params["attn_w"]
    score = (enc @ aw[H:, :]) + (h0 @ aw[:H, :])[:, None, :] + params["attn_b"]
    attn = jax.nn.softmax(score, axis=1)
    context = jnp.sum(attn * enc, axis=1)

    x = jnp.concatenate([emb, context], axis=1) @ params["comb_w"] + params["comb_b"]

    gi = x @ params["w_ih"] + params["b_ih"]
    gh = h0 @ params["w_hh"] + params["b_hh"]
    r = jax.nn.sigmoid(gi[:, :H] + gh[:, :H])
    z = jax.nn.sigmoid(gi[:, H:2 * H] + gh[:, H:2 * H])
    n = jnp.tanh(gi[:, 2 * H:] + r * gh[:, 2 * H:])
    h_new = (1.0 - z) * n + z * h0
    out = h_new

    eos = out @ params["eos_w"] + params["eos_b"]
    pred = out @ params["pred_w"] + params["pred_b"]
    pred_log = jax.nn.log_softmax(jnp.concatenate([pred, eos], axis=1), axis=1)

    oc = jnp.concatenate([jnp.broadcast_to(out[:, None, :], (B, L, H)), enc], axis=2)
    f = jax.nn.selu(jax.nn.selu(oc) @ params["fuse_w"] + params["fuse_b"])
    cp = (f @ params["copy_w"] + params["copy_b"])[..., 0]
    copy_log = jax.nn.log_softmax(jnp.concatenate([cp, eos], axis=1), axis=1)
    return pred_log, copy_log, h_new


def init_params(key, *, E, H, R, fuse_dim=100):
    shapes = {
        "attn_w": (2 * H, 1), "attn_b": (1, 1),
        "comb_w": (E + H, E), "comb_b": (1, E),
        "w_ih": (E, 3 * H), "w_hh": (H, 3 * H),
        "b_ih": (1, 3 * H), "b_hh": (1, 3 * H),
        "eos_w": (H, 1), "eos_b": (1, 1),
        "pred_w": (H, R), "pred_b": (1, R),
        "fuse_w": (2 * H, fuse_dim), "fuse_b": (1, fuse_dim),
        "copy_w": (fuse_dim, 1), "copy_b": (1, 1),
    }
    params = {}
    keys = jax.random.split(key, len(shapes))
    for k_rng, (name, shape) in zip(keys, shapes.items()):
        params[name] = (0.1 * jax.random.normal(k_rng, shape)).astype(jnp.float32)
    return params


if __name__ == "__main__":
    # Small config consistent with the module: B=2 batch, L=8 (max sentence
    # length), H=32 (decoder_num_units), E=32 (embedding_dim), R=5 relations.
    B, L, H, E, R = 2, 8, 32, 32, 5

    root = jax.random.PRNGKey(0)
    k_emb, k_h, k_enc, k_par = jax.random.split(root, 4)
    emb = jax.random.normal(k_emb, (B, E), dtype=jnp.float32)
    h0 = jax.random.normal(k_h, (B, H), dtype=jnp.float32)
    enc = jax.random.normal(k_enc, (B, L, H), dtype=jnp.float32)
    params = init_params(k_par, E=E, H=H, R=R)

    ref_pred, ref_copy, ref_h = reference(emb, h0, enc, params)

    # f32 MXU path
    pred_log, copy_log, h_new = decode_step(emb, h0, enc, params)
    jax.block_until_ready((pred_log, copy_log, h_new))
    assert jnp.allclose(pred_log, ref_pred, atol=2e-3, rtol=2e-3)
    assert jnp.allclose(copy_log, ref_copy, atol=2e-3, rtol=2e-3)
    assert jnp.allclose(h_new, ref_h, atol=2e-3, rtol=2e-3)

    # bf16 MXU operands with f32 accumulation (the v6e/v7x fast path).
    # TODO(synk): validate multi-step drift of the recurrent state before using
    # the bf16 path inside a real autoregressive decode loop.
    pred_bf, copy_bf, h_bf = decode_step(emb, h0, enc, params,
                                         compute_dtype=jnp.bfloat16)
    jax.block_until_ready((pred_bf, copy_bf, h_bf))
    assert jnp.allclose(pred_bf, ref_pred, atol=1e-1, rtol=1e-1)
    assert jnp.allclose(copy_bf, ref_copy, atol=1e-1, rtol=1e-1)
    assert jnp.allclose(h_bf, ref_h, atol=1e-1, rtol=1e-1)

    print("KERNEL_OK")
</pallas_src>

<mosaic_0001>
module attributes {stable_mosaic.version = 11 : i64} {
  func.func @precompute_kernel(%arg0: i32, %arg1: memref<8x8x32xf32, #tpu.memory_space<vmem>>, %arg2: memref<1x32xf32, #tpu.memory_space<vmem>>, %arg3: memref<32x128xf32, #tpu.memory_space<vmem>>, %arg4: memref<8x8x1xf32, #tpu.memory_space<vmem>>, %arg5: memref<8x8x128xf32, #tpu.memory_space<vmem>>) attributes {dimension_semantics = [#tpu.dimension_semantics<parallel>], iteration_bounds = array<i64: 1>, scalar_prefetch = 0 : i64, scratch_operands = 0 : i64, tpu.core_type = #tpu.core_type<tc>, window_params = [{transform_indices = @transform_0, window_bounds = array<i64: 8, 8, 32>}, {pipeline_mode = #tpu.pipeline_mode<synchronous>, transform_indices = @transform_1, window_bounds = array<i64: 1, 32>}, {pipeline_mode = #tpu.pipeline_mode<synchronous>, transform_indices = @transform_2, window_bounds = array<i64: 32, 128>}, {transform_indices = @transform_3, window_bounds = array<i64: 8, 8, 1>}, {transform_indices = @transform_4, window_bounds = array<i64: 8, 8, 128>}]} {
    %c0 = arith.constant 0 : index
    %c0_0 = arith.constant 0 : index
    %c0_1 = arith.constant 0 : index
    %0 = vector.load %arg1[%c0, %c0_0, %c0_1] : memref<8x8x32xf32, #tpu.memory_space<vmem>>, vector<8x8x32xf32>
    %c0_2 = arith.constant 0 : index
    %c0_3 = arith.constant 0 : index
    %1 = vector.load %arg2[%c0_2, %c0_3] : memref<1x32xf32, #tpu.memory_space<vmem>>, vector<1x32xf32>
    %2 = vector.shape_cast %1 : vector<1x32xf32> to vector<1x1x32xf32>
    %3 = vector.broadcast %2 : vector<1x1x32xf32> to vector<8x8x32xf32>
    %4 = arith.mulf %0, %3 : vector<8x8x32xf32>
    %cst = arith.constant dense<0.000000e+00> : vector<8x8xf32>
    %5 = vector.multi_reduction <add>, %4, %cst [2] : vector<8x8x32xf32> to vector<8x8xf32>
    %6 = vector.shape_cast %5 : vector<8x8xf32> to vector<8x8x1xf32>
    %c0_4 = arith.constant 0 : index
    %c0_5 = arith.constant 0 : index
    %c0_6 = arith.constant 0 : index
    %7 = vector.load %arg4[%c0_4, %c0_5, %c0_6] : memref<8x8x1xf32, #tpu.memory_space<vmem>>, vector<8x8x1xf32>
    tpu.vector_store %arg4[%c0_4, %c0_5, %c0_6], %6 {strides = array<i32>} : memref<8x8x1xf32, #tpu.memory_space<vmem>>, vector<8x8x1xf32>,
    %cst_7 = arith.constant 0.000000e+00 : f32
    %8 = vector.broadcast %cst_7 : f32 to vector<8x8x32xf32>
    %9 = arith.cmpf ogt, %0, %8 : vector<8x8x32xf32>
    %cst_8 = arith.constant 0.000000e+00 : f32
    %10 = vector.broadcast %cst_8 : f32 to vector<8x8x32xf32>
    %11 = arith.minimumf %0, %10 : vector<8x8x32xf32>
    %12 = math.exp %11 : vector<8x8x32xf32>
    %cst_9 = arith.constant 1.000000e+00 : f32
    %13 = vector.broadcast %cst_9 : f32 to vector<8x8x32xf32>
    %14 = arith.subf %12, %13 : vector<8x8x32xf32>
    %cst_10 = arith.constant 1.67326319 : f32
    %15 = vector.broadcast %cst_10 : f32 to vector<8x8x32xf32>
    %16 = arith.mulf %15, %14 : vector<8x8x32xf32>
    %17 = arith.select %9, %0, %16 : vector<8x8x32xi1>, vector<8x8x32xf32>
    %cst_11 = arith.constant 1.05070102 : f32
    %18 = vector.broadcast %cst_11 : f32 to vector<8x8x32xf32>
    %19 = arith.mulf %18, %17 : vector<8x8x32xf32>
    %20 = vector.shape_cast %19 : vector<8x8x32xf32> to vector<64x32xf32>
    %c0_12 = arith.constant 0 : index
    %c0_13 = arith.constant 0 : index
    %21 = vector.load %arg3[%c0_12, %c0_13] : memref<32x128xf32, #tpu.memory_space<vmem>>, vector<32x128xf32>
    %cst_14 = arith.constant dense<0.000000e+00> : vector<64x128xf32>
    %22 = tpu.matmul %20, %21, %cst_14 {dimension_numbers = #tpu.dot_dimension_numbers<[1], [0], [0], [1], [0, 0, 1, 1], [], []>} : vector<64x32xf32>, vector<32x128xf32>, vector<64x128xf32> -> vector<64x128xf32>
    %23 = vector.shape_cast %22 : vector<64x128xf32> to vector<8x8x128xf32>
    %c0_15 = arith.constant 0 : index
    %c0_16 = arith.constant 0 : index
    %c0_17 = arith.constant 0 : index
    %24 = vector.load %arg5[%c0_15, %c0_16, %c0_17] : memref<8x8x128xf32, #tpu.memory_space<vmem>>, vector<8x8x128xf32>
    tpu.vector_store %arg5[%c0_15, %c0_16, %c0_17], %23 {strides = array<i32>} : memref<8x8x128xf32, #tpu.memory_space<vmem>>, vector<8x8x128xf32>,
    return
  }
  func.func @transform_0(%arg0: i32) -> (i32, i32, i32) {
    %c0_i32 = arith.constant 0 : i32
    %c0_i32_0 = arith.constant 0 : i32
    %c0_i32_1 = arith.constant 0 : i32
    return %arg0, %c0_i32, %c0_i32_0 : i32, i32, i32
  }
  func.func @transform_1(%arg0: i32) -> (i32, i32) {
    %c0_i32 = arith.constant 0 : i32
    %c0_i32_0 = arith.constant 0 : i32
    %c0_i32_1 = arith.constant 0 : i32
    return %c0_i32, %c0_i32_0 : i32, i32
  }
  func.func @transform_2(%arg0: i32) -> (i32, i32) {
    %c0_i32 = arith.constant 0 : i32
    %c0_i32_0 = arith.constant 0 : i32
    %c0_i32_1 = arith.constant 0 : i32
    return %c0_i32, %c0_i32_0 : i32, i32
  }
  func.func @transform_3(%arg0: i32) -> (i32, i32, i32) {
    %c0_i32 = arith.constant 0 : i32
    %c0_i32_0 = arith.constant 0 : i32
    %c0_i32_1 = arith.constant 0 : i32
    return %arg0, %c0_i32, %c0_i32_0 : i32, i32, i32
  }
  func.func @transform_4(%arg0: i32) -> (i32, i32, i32) {
    %c0_i32 = arith.constant 0 : i32
    %c0_i32_0 = arith.constant 0 : i32
    %c0_i32_1 = arith.constant 0 : i32
    return %arg0, %c0_i32, %c0_i32_0 : i32, i32, i32
  }
}

</mosaic_0001>

<bundles_post_ra>
// kernel: tpu_custom_call.1
= control target key start
LH: loop header
LB: loop body
LE: loop exit
PB: predicated region body
PF: predicated region fallthrough
CT: control target
= control target key end

     0   :  { %10 = vsyncpa [#allocation3], 0  ;;  %s634_s0 = inlined_call_operand.hbm [shape: f32[8,8,32], index: 0, kind: input, shape index: {}]   ;;  %s635_s1 = inlined_call_operand.vmem [shape: f32[1,32], index: 1, kind: input, shape index: {}]   ;;  %s636_s2 = inlined_call_operand.hbm [shape: f32[32,128], index: 2, kind: input, shape index: {}]   ;;  %s637_s3 = inlined_call_operand.vmem [shape: f32[8,8,1], index: 3, kind: output, shape index: {0}]   ;;  %s638_s4 = inlined_call_operand.hbm [shape: f32[8,8,128], index: 4, kind: output, shape index: {1}]  }
   0x1   :  { %11 = vsyncpa [#allocation6], 0 }
   0x2   :  { %12 = vsyncpa [#allocation4], 0  ;;  %s473_s15 = smov [#allocation2]  }
   0x3   :  { %s18_s16 = sshll.u32 %s473_s15, 4  ;;  %s19_s16 = int_to_ptr.vmem [resolvable:$true] %s18_s16 }
   0x4   :  { %s415_s17 = scalar_lea.vmem %s19_s16, 1024  ;;  %p420_p1 = scmp.lt.s32.totalorder %s19_s16, %s19_s16 }
   0x5   :  { %p416_p0 = scmp.ne.s32.totalorder %s19_s16, %s415_s17  ;;  %p421_p2 = scmp.lt.s32.totalorder %s415_s17, %s415_s17 }
   0x7   :  { %p422_p3 = por %p421_p2, %p420_p1 }
   0x9   :  { %p423_p4 = pnand %p422_p3, %p416_p0 }
   0xb   :  { %426 = shalt.err (!%p423_p4)
}
   0xc   :  { %s474_s18 = smov 128   ;;  %s475_s19 = smov 8  }
   0xd   :  { %24 = dma.hbm_to_vmem [thread:$0]  %s634_s0, 1024, %s19_s16, [#allocation3], %s474_s18, %s474_s18, %s475_s19  }
   0xe   :  { %s476_s22 = smov [#allocation5]  }
   0xf   :  { %s32_s23 = sshll.u32 %s476_s22, 4  ;;  %s33_s23 = int_to_ptr.vmem [resolvable:$true] %s32_s23 }
  0x10   :  { %s435_s24 = scalar_lea.vmem %s33_s23, 512  ;;  %p440_p6 = scmp.lt.s32.totalorder %s33_s23, %s33_s23 }
  0x11   :  { %p436_p5 = scmp.ne.s32.totalorder %s33_s23, %s435_s24  ;;  %p441_p7 = scmp.lt.s32.totalorder %s435_s24, %s435_s24 }
  0x13   :  { %p442_p8 = por %p441_p7, %p440_p6 }
  0x15   :  { %p443_p9 = pnand %p442_p8, %p436_p5 }
  0x17   :  { %446 = shalt.err (!%p443_p9)
}
  0x18   :  { %38 = dma.hbm_to_vmem [thread:$0]  %s636_s2, 512, %s33_s23, [#allocation6], %s474_s18, %s474_s18, %s475_s19  }
  0x19   :  { %467 = dma.done.wait [#allocation3], 1024  }
  0x1a   :  { %468 = vsyncadd [#allocation3], 4294966272 }
  0x1b   :  { %469 = dma.done.wait [#allocation6], 512  }
  0x1c   :  { %470 = vsyncadd [#allocation6], 4294966784  ;;  %v169_v0 = vld [vmem:[#allocation5 + $0x18] sm:$0xff]  ;;  %v168_v1 = vld [vmem:[#allocation5 + $0x10] sm:$0xff]  ;;  %vm68_vm0 = vcmask 261120   ;;  %vm93_vm9 = vcmask 7168  }
  0x1d   :  { %358 = vmatprep.subr.mxu0 %v169_v0  ;;  %378 = vmatprep.subr.mxu1 %v169_v0  ;;  %v515_v2 = vld [vmem:[#allocation2] sm:$0xff]  ;;  %v167_v4 = vld [vmem:[#allocation5 + $0x8] sm:$0xff]  ;;  %v527_v11 = vld [vmem:[#allocation2 + $0x10] sm:$0xff]  ;;  %s477_s16 = smov [#allocation7]  }
  0x1e   :  { %v517_v3 = vld [vmem:[#allocation2 + $0x20] sm:$0xff]  ;;  %359 = vmatpush3.msra.mxu0 %v169_v0  ;;  %382 = vmatpush3.msra.mxu1 %v169_v0  ;;  %v110_v5 = vmin.f32 %v515_v2, 0.0  ;;  %v521_v7 = vld [vmem:[#allocation2 + $0x8] sm:$0xff]  ;;  %v529_v12 = vld [vmem:[#allocation2 + $0x30] sm:$0xff]  ;;  %v112_v16 = vmin.f32 %v527_v11, 0.0  ;;  %vm102_vm1 = vcmp.gt.f32.partialorder %v515_v2, 0.0 }
  0x1f   :  { %v114_v6 = vmin.f32 %v517_v3, 0.0  ;;  %v523_v8 = vld [vmem:[#allocation2 + $0x28] sm:$0xff]  ;;  %360 = vmatprep.subr.mxu0 %v168_v1  ;;  %379 = vmatprep.subr.mxu1 %v168_v1  ;;  %v111_v9 = vmin.f32 %v521_v7, 0.0  ;;  %v166_v13 = vld [vmem:[#allocation5] sm:$0xff]  ;;  %v116_v19 = vmin.f32 %v529_v12, 0.0  ;;  %v533_v21 = vld [vmem:[#allocation2 + $0x18] sm:$0xff] }
  0x20   :  { %v115_v10 = vmin.f32 %v523_v8, 0.0  ;;  %361 = vmatpush3.msra.mxu0 %v168_v1  ;;  %383 = vmatpush3.msra.mxu1 %v168_v1  ;;  %v118_v14 = vmul.f32 1.442695, %v110_v5  ;;  %v122_v20 = vmul.f32 1.442695, %v112_v16  ;;  %v535_v22 = vld [vmem:[#allocation2 + $0x38] sm:$0xff] }
  0x21   :  { %v126_v15 = vmul.f32 1.442695, %v114_v6  ;;  %362 = vmatprep.subr.mxu0 %v167_v4  ;;  %380 = vmatprep.subr.mxu1 %v167_v4  ;;  %v120_v17 = vmul.f32 1.442695, %v111_v9  ;;  %v329_v23 = vld [vmem:[%s635_s1] ss:$0 sm:$0xff] }
  0x22   :  { %v128_v18 = vmul.f32 1.442695, %v115_v10  ;;  %363 = vmatpush3.msra.mxu0 %v167_v4  ;;  %384 = vmatpush3.msra.mxu1 %v167_v4  ;;  %391 = vpow2.f32 %v118_v14  ;;  %v130_v24 = vmul.f32 1.442695, %v116_v19  ;;  %v113_v25 = vmin.f32 %v533_v21, 0.0  ;;  %s314_s17 = sshll.u32 %s477_s16, 4  ;;  %s315_s17 = int_to_ptr.vmem [resolvable:$true] %s314_s17 }
  0x23   :  { %364 = vmatprep.subr.mxu0 %v166_v13  ;;  %381 = vmatprep.subr.mxu1 %v166_v13  ;;  %393 = vpow2.f32 %v126_v15  ;;  %v117_v26 = vmin.f32 %v535_v22, 0.0  ;;  %v62_v27 = vmul.f32 %v329_v23, %v527_v11  ;;  %v60_v29 = vmul.f32 %v329_v23, %v515_v2  ;;  %p452_p11 = scmp.lt.s32.totalorder %s315_s17, %s315_s17 }
  0x24   :  { %365 = vmatpush3.msra.mxu0 %v166_v13  ;;  %385 = vmatpush3.msra.mxu1 %v166_v13  ;;  %395 = vpow2.f32 %v120_v17  ;;  %v124_v28 = vmul.f32 1.442695, %v113_v25  ;;  %v63_v30 = vmul.f32 %v329_v23, %v533_v21  ;;  %v61_v33 = vmul.f32 %v329_v23, %v521_v7 }
  0x25   :  { %397 = vpow2.f32 %v128_v18  ;;  %v132_v31 = vmul.f32 1.442695, %v117_v26  ;;  %v75_v32 = vsel %vm68_vm0, %v62_v27, 0.0  ;;  %v69_v34 = vsel %vm68_vm0, %v60_v29, 0.0 }
  0x26   :  { %399 = vpow2.f32 %v122_v20  ;;  %76 = vadd.xlane.f32.xlu1 %v75_v32  ;;  %70 = vadd.xlane.f32.xlu0 %v69_v34  ;;  %v78_v35 = vsel %vm68_vm0, %v63_v30, 0.0  ;;  %v65_v36 = vmul.f32 %v329_v23, %v523_v8  ;;  %v72_v37 = vsel %vm68_vm0, %v61_v33, 0.0 }
  0x27   :  { %401 = vpow2.f32 %v130_v24  ;;  %v64_v38 = vmul.f32 %v329_v23, %v517_v3  ;;  %v67_v40 = vmul.f32 %v329_v23, %v535_v22  ;;  %v66_v42 = vmul.f32 %v329_v23, %v529_v12 }
  0x28   :  { %403 = vpow2.f32 %v124_v28  ;;  %v84_v39 = vsel %vm68_vm0, %v65_v36, 0.0  ;;  %vm106_vm2 = vcmp.gt.f32.partialorder %v517_v3, 0.0  ;;  %vm103_vm3 = vcmp.gt.f32.partialorder %v521_v7, 0.0 }
  0x29   :  { %405 = vpow2.f32 %v132_v31  ;;  %v81_v41 = vsel %vm68_vm0, %v64_v38, 0.0  ;;  %v90_v46 = vsel %vm68_vm0, %v67_v40, 0.0  ;;  %v87_v49 = vsel %vm68_vm0, %v66_v42, 0.0 }
  0x2a   :  { %79 = vadd.xlane.f32.xlu1 %v78_v35  ;;  %73 = vadd.xlane.f32.xlu0 %v72_v37  ;;  %vm107_vm4 = vcmp.gt.f32.partialorder %v523_v8, 0.0  ;;  %vm104_vm5 = vcmp.gt.f32.partialorder %v527_v11, 0.0  ;;  %vm108_vm6 = vcmp.gt.f32.partialorder %v529_v12, 0.0  ;;  %vm105_vm7 = vcmp.gt.f32.partialorder %v533_v21, 0.0 }
  0x2b   :  { %vm109_vm8 = vcmp.gt.f32.partialorder %v535_v22, 0.0 }
  0x2e   :  { %85 = vadd.xlane.f32.xlu1 %v84_v39  ;;  %82 = vadd.xlane.f32.xlu0 %v81_v41 }
  0x2f   :  { %v392_v43 = vpop.eup %391 }
  0x30   :  { %v394_v44 = vpop.eup %393  ;;  %v330_v45 = vadd.f32 -1.0, %v392_v43 }
  0x31   :  { %v396_v47 = vpop.eup %395  ;;  %v334_v48 = vadd.f32 -1.0, %v394_v44 }
  0x32   :  { %v398_v50 = vpop.eup %397  ;;  %v142_v51 = vmul.f32 1.6732632, %v330_v45  ;;  %v331_v52 = vadd.f32 -1.0, %v396_v47  ;;  %91 = vadd.xlane.f32.xlu1 %v90_v46  ;;  %88 = vadd.xlane.f32.xlu0 %v87_v49 }
  0x33   :  { %v400_v53 = vpop.eup %399  ;;  %v146_v54 = vmul.f32 1.6732632, %v334_v48  ;;  %v335_v55 = vadd.f32 -1.0, %v398_v50 }
  0x34   :  { %v402_v56 = vpop.eup %401  ;;  %v150_v57 = vsel %vm102_vm1, %v515_v2, %v142_v51  ;;  %v143_v58 = vmul.f32 1.6732632, %v331_v52  ;;  %v332_v59 = vadd.f32 -1.0, %v400_v53 }
  0x35   :  { %v404_v60 = vpop.eup %403  ;;  %v158_v61 = vmul.f32 1.050701, %v150_v57  ;;  %v154_v62 = vsel %vm106_vm2, %v517_v3, %v146_v54  ;;  %v147_v63 = vmul.f32 1.6732632, %v335_v55  ;;  %v336_v0 = vadd.f32 -1.0, %v402_v56 }
  0x36   :  { %v406_v1 = vpop.eup %405  ;;  %v162_v4 = vmul.f32 1.050701, %v154_v62  ;;  %v151_v5 = vsel %vm103_vm3, %v521_v7, %v143_v58  ;;  %v144_v2 = vmul.f32 1.6732632, %v332_v59  ;;  %v333_v6 = vadd.f32 -1.0, %v404_v60 }
  0x37   :  { %366 = vmatprep.mubr.msk.f32.mxu0 %vm68_vm0, %v158_v61  ;;  %v159_v9 = vmul.f32 1.050701, %v151_v5  ;;  %v155_v10 = vsel %vm107_vm4, %v523_v8, %v147_v63  ;;  %v148_v13 = vmul.f32 1.6732632, %v336_v0  ;;  %v337_v14 = vadd.f32 -1.0, %v406_v1 }
  0x38   :  { %372 = vmatprep.mubr.msk.f32.mxu1 %vm68_vm0, %v162_v4  ;;  %v163_v3 = vmul.f32 1.050701, %v155_v10  ;;  %v152_v15 = vsel %vm104_vm5, %v527_v11, %v144_v2  ;;  %v145_v16 = vmul.f32 1.6732632, %v333_v6 }
  0x39   :  { %367 = vmatmul.mubr.msk.f32.vlgmr.msra.gmra.mxu0 %vm68_vm0, %v159_v9  ;;  %v160_v7 = vmul.f32 1.050701, %v152_v15  ;;  %v156_v17 = vsel %vm108_vm6, %v529_v12, %v148_v13  ;;  %v149_v8 = vmul.f32 1.6732632, %v337_v14 }
  0x3a   :  { %373 = vmatmul.mubr.msk.f32.vlgmr.msra.gmra.mxu1 %vm68_vm0, %v163_v3  ;;  %v164_v18 = vmul.f32 1.050701, %v156_v17  ;;  %v153_v19 = vsel %vm105_vm7, %v533_v21, %v145_v16 }
  0x3b   :  { %369 = vmatprep.mubr.msk.f32.mxu0 %vm68_vm0, %v160_v7  ;;  %v161_v11 = vmul.f32 1.050701, %v153_v19  ;;  %v157_v20 = vsel %vm109_vm8, %v535_v22, %v149_v8 }
  0x3c   :  { %375 = vmatprep.mubr.msk.f32.mxu1 %vm68_vm0, %v164_v18  ;;  %v165_v23 = vmul.f32 1.050701, %v157_v20 }
  0x3d   :  { %370 = vmatmul.mubr.msk.f32.gmra.mxu0 %vm68_vm0, %v161_v11 }
  0x3e   :  { %376 = vmatmul.mubr.msk.f32.gmra.mxu1 %vm68_vm0, %v165_v23 }
  0xaf   :  { %v77_v12 = vpop.xlane.xlu1 %76  ;;  %v71_v21 = vpop.xlane.xlu0 %70 }
  0xb0   :  { %96 = vst.msk [vmem:[%s637_s3 + $0x10] sm:$0xff] %vm93_vm9, %v77_v12  ;;  %94 = vst.msk [vmem:[%s637_s3] sm:$0xff] %vm93_vm9, %v71_v21 }
  0xb3   :  { %v80_v22 = vpop.xlane.xlu1 %79  ;;  %v74_v24 = vpop.xlane.xlu0 %73 }
  0xb4   :  { %97 = vst.msk [vmem:[%s637_s3 + $0x18] sm:$0xff] %vm93_vm9, %v80_v22  ;;  %95 = vst.msk [vmem:[%s637_s3 + $0x8] sm:$0xff] %vm93_vm9, %v74_v24 }
  0xb7   :  { %v86_v25 = vpop.xlane.xlu1 %85  ;;  %v83_v26 = vpop.xlane.xlu0 %82 }
  0xb8   :  { %99 = vst.msk [vmem:[%s637_s3 + $0x28] sm:$0xff] %vm93_vm9, %v86_v25  ;;  %98 = vst.msk [vmem:[%s637_s3 + $0x20] sm:$0xff] %vm93_vm9, %v83_v26 }
  0xbb   :  { %v92_v27 = vpop.xlane.xlu1 %91  ;;  %v89_v28 = vpop.xlane.xlu0 %88 }
  0xbc   :  { %101 = vst.msk [vmem:[%s637_s3 + $0x38] sm:$0xff] %vm93_vm9, %v92_v27  ;;  %100 = vst.msk [vmem:[%s637_s3 + $0x30] sm:$0xff] %vm93_vm9, %v89_v28  ;;  %s447_s3 = scalar_lea.vmem %s315_s17, 1024 }
  0xbd   :  { %p448_p10 = scmp.ne.s32.totalorder %s315_s17, %s447_s3  ;;  %p453_p12 = scmp.lt.s32.totalorder %s447_s3, %s447_s3 }
  0xbf   :  { %p454_p13 = por %p453_p12, %p452_p11 }
  0xc1   :  { %p455_p0 = pnand %p454_p13, %p448_p10 }
  0xf9   :  { %v368_v29 = vpop.f32.mrf.mxu0 }
  0xfa   :  { %300 = vst [vmem:[#allocation7 + $0x8] sm:$0xff] %v368_v29  ;;  %v374_v30 = vpop.f32.mrf.mxu1 }
  0xfb   :  { %304 = vst [vmem:[#allocation7 + $0x28] sm:$0xff] %v374_v30  ;;  %v260_v31 = vpop.f32.mrf.mxu0 }
  0xfc   :  { %299 = vst [vmem:[#allocation7] sm:$0xff] %v260_v31  ;;  %v280_v32 = vpop.f32.mrf.mxu1 }
  0xfd   :  { %303 = vst [vmem:[#allocation7 + $0x20] sm:$0xff] %v280_v32  ;;  %v371_v33 = vpop.f32.mrf.mxu0 }
  0xfe   :  { %302 = vst [vmem:[#allocation7 + $0x18] sm:$0xff] %v371_v33  ;;  %v377_v34 = vpop.f32.mrf.mxu1 }
  0xff   :  { %306 = vst [vmem:[#allocation7 + $0x38] sm:$0xff] %v377_v34  ;;  %v270_v35 = vpop.f32.mrf.mxu0 }
 0x100   :  { %301 = vst [vmem:[#allocation7 + $0x10] sm:$0xff] %v270_v35  ;;  %v290_v36 = vpop.f32.mrf.mxu1 }
 0x101   :  { %305 = vst [vmem:[#allocation7 + $0x30] sm:$0xff] %v290_v36 }
 0x102   :  { %458 = shalt.err (!%p455_p0)
}
 0x103   :  { %320 = dma.vmem_to_hbm [thread:$0]  %s315_s17, 1024, %s638_s4, [#allocation4], %s474_s18, %s474_s18, %s475_s19  }
 0x104   :  { %471 = dma.done.wait [#allocation4], 1024  }
 0x105   :  { %472 = vsyncadd [#allocation4], 4294966272 }
 0x106   :  { %326 = vsyncpa [#allocation3], 1 }
 0x107   :  { %327 = vsyncpa [#allocation6], 1 }
 0x108   :  { %328 = vsyncpa [#allocation4], 1 }

</bundles_post_ra>
